<compile_context>
chip_gen: v7x
topology: tpu7x:2x2x1
jax: 0.10.0
libtpu: 0.0.40
codegen_flags: <defaults>
</compile_context>

<pallas_src>
import functools
import numpy as np
import jax
import jax.numpy as jnp
from jax.experimental import pallas as pl
from jax.experimental.pallas import tpu as pltpu

UPSAMPLE_STRIDE2KERNEL_DICT = {(1, 2): (1, 5), (1, 4): (1, 7), (2, 1): (5, 1), (2, 2): (3, 3)}
UPSAMPLE_STRIDE2PAD_DICT = {(1, 2): (2, 2, 0, 0), (1, 4): (3, 3, 0, 0), (2, 1): (0, 0, 2, 2), (2, 2): (1, 1, 1, 1)}


def _interp_matrix(n_in, n_out):
    """Bilinear interpolation matrix (align_corners=True): out = A @ in.  numpy f32."""
    A = np.zeros((n_out, n_in), dtype=np.float32)
    for i in range(n_out):
        src = 0.0 if n_out == 1 else i * (n_in - 1) / (n_out - 1)
        i0 = min(int(np.floor(src)), n_in - 1)
        i1 = min(i0 + 1, n_in - 1)
        f = src - i0
        A[i, i0] += 1.0 - f
        A[i, i1] += f
    return A


def _chip_kind():
    try:
        return jax.devices()[0].device_kind.lower()
    except Exception:
        return ""


def _pick_bt(B, Hi, Ho):
    """Batch-tile size per perf review:
       * cap bt*Hi at the MXU K target (128 on v5e, 256 on v6e/v7x) -> bounds the
         kron BH (bt^2) and keeps the left-matmul reduction dim MXU-friendly,
       * keep block row dims multiples of 8 (unless the block covers the full batch),
       * single-TC chips (v5e/v6e): fewer, bigger steps; multi-TC (v7x): even step count."""
    kind = _chip_kind()
    small_mxu = ("v5e" in kind) or ("v5 lite" in kind)
    single_tc = small_mxu or ("v6" in kind)
    k_target = 128 if small_mxu else 256

    def row_ok(bt):
        return bt == B or ((bt * Hi) % 8 == 0 and (bt * Ho) % 8 == 0)

    cands = [bt for bt in range(1, B + 1)
             if B % bt == 0 and row_ok(bt) and bt * Hi <= k_target]
    if not cands:
        cands = [bt for bt in range(1, B + 1) if B % bt == 0 and row_ok(bt)]
    if not single_tc:
        even = [bt for bt in cands if (B // bt) % 2 == 0]
        if even:
            cands = even
    return max(cands)


def _upsample_conv_kernel(x_ref, rt_ref, bh_ref, bias_ref, o_ref, *, Kh, lane_out):
    # x_ref   : (bt*Hi, C*Wi)       rows=(b,hi), lanes=(ci,wi)
    # rt_ref  : (C*Wi, Kh*C*Wo)     conv weights fused with circularly-padded W interp
    # bh_ref  : (Kh, bt*Ho, bt*Hi)  zero-padded H interp, kh-shifted, block-diag over bt
    # bias_ref: (1, C*Wo)
    # o_ref   : (bt*Ho, C*Wo)       rows=(b,ho), lanes=(co,wo) -- lane-dense output
    #
    # Per-kh fusion + single running accumulator: at most one y_kh slice and one
    # partial tile live at a time (review items 1 & 6) -> no register-file spills.
    x = x_ref[...]
    acc = None
    for kh in range(Kh):
        y_kh = jnp.dot(x, rt_ref[:, kh * lane_out:(kh + 1) * lane_out],
                       preferred_element_type=jnp.float32)
        z = jnp.dot(bh_ref[kh], y_kh, preferred_element_type=jnp.float32)
        acc = z if acc is None else acc + z
    o_ref[...] = (acc + bias_ref[...]).astype(o_ref.dtype)


def upsample_forward(x, weight=None, bias=None, stride=(2, 2), with_conv=True,
                     bt=None, use_bf16=False, nchw_out=True):
    """Pallas implementation of Upsample.forward (bilinear upsample [+ CircularConv2d]).

    x: (B, C, H, W) float32, weight: (C, C, Kh, Kw), bias: (C,).
    """
    B, C, Hi, Wi = x.shape
    sh, sw = stride
    Ho, Wo = Hi * sh, Wi * sw

    if with_conv:
        Kh, Kw = UPSAMPLE_STRIDE2KERNEL_DICT[stride]
        wl, wr, vt, vb = UPSAMPLE_STRIDE2PAD_DICT[stride]
        w = weight.astype(jnp.float32)
        b = bias.astype(jnp.float32)
    else:
        # Pure bilinear upsample == 1x1 identity "conv" with no padding.
        Kh, Kw = 1, 1
        wl = wr = vt = vb = 0
        w = jnp.eye(C, dtype=jnp.float32).reshape(C, C, 1, 1)
        b = jnp.zeros((C,), jnp.float32)

    # VALID conv over the padded tensor must reproduce a same-size output (review concern 3).
    assert wl + wr == Kw - 1 and vt + vb == Kh - 1, "pad/kernel mismatch for this stride"
    assert wl <= Wo and wr <= Wo, "circular pad wider than the upsampled width"

    # --- static interpolation matrices with the padding folded in ---
    Ah = _interp_matrix(Hi, Ho)                                            # (Ho, Hi)
    Aw = _interp_matrix(Wi, Wo)                                            # (Wo, Wi)
    Ahp = np.concatenate([np.zeros((vt, Hi), np.float32), Ah,
                          np.zeros((vb, Hi), np.float32)], axis=0)         # (Ho+vt+vb, Hi)
    if wl + wr > 0:
        Awp = np.concatenate([Aw[Wo - wl:], Aw, Aw[:wr]], axis=0)          # (Wo+wl+wr, Wi)
    else:
        Awp = Aw
    # kw-shifted W-interp slices: AK[kw, wo, wi] = Awp[wo+kw, wi]
    AK = np.stack([Awp[kw:kw + Wo, :] for kw in range(Kw)], axis=0)        # (Kw, Wo, Wi)

    if bt is None:
        bt = _pick_bt(B, Hi, Ho)
    assert B % bt == 0
    # Row dims of partial blocks must be multiples of 8 (review concern 2).
    assert bt == B or ((bt * Hi) % 8 == 0 and (bt * Ho) % 8 == 0), \
        "block row dims must be multiples of 8 (or cover the full batch)"

    # kh-shifted H-interp, block-diagonal over the bt batch items of one grid step.
    # bt is capped (bt*Hi <= MXU K target) so this stays small (review item 2/5).
    BH = np.stack(
        [np.kron(np.eye(bt, dtype=np.float32), Ahp[kh:kh + Ho, :]) for kh in range(Kh)],
        axis=0)                                                            # (Kh, bt*Ho, bt*Hi)

    # Fuse conv weights with the shifted W-interp (and the kw sum):
    #   Rt[(ci,wi), (kh,co,wo)] = sum_kw W[co,ci,kh,kw] * Awp[wo+kw, wi]
    Rt = jnp.einsum('ocak,kwi->ciaow', w, jnp.asarray(AK),
                    precision=jax.lax.Precision.HIGHEST)
    Rt = Rt.reshape(C * Wi, Kh * C * Wo)                                   # (C*Wi, Kh*C*Wo)

    lane_out = C * Wo
    brow = jnp.repeat(b, Wo)[None, :]                                      # (1, C*Wo)

    # lane-friendly 2D layout: rows=(b,hi), lanes=(ci,wi)
    x2 = x.transpose(0, 2, 1, 3).reshape(B * Hi, C * Wi)
    BHj = jnp.asarray(BH)
    if use_bf16:
        # TODO(synk): validate accuracy on production value ranges before enabling.
        x2 = x2.astype(jnp.bfloat16)
        Rt = Rt.astype(jnp.bfloat16)
        BHj = BHj.astype(jnp.bfloat16)

    kernel = functools.partial(_upsample_conv_kernel, Kh=Kh, lane_out=lane_out)

    # Explicit VMEM budget (review item 4): x/out blocks (triple headroom for the
    # pipeline) + invariant operators (x2 if double-buffered fallback kicks in).
    x_blk = bt * Hi * C * Wi * x2.dtype.itemsize
    o_blk = bt * Ho * lane_out * x.dtype.itemsize
    inv = (Rt.size * Rt.dtype.itemsize + BHj.size * BHj.dtype.itemsize
           + lane_out * brow.dtype.itemsize)
    need = 3 * (x_blk + o_blk) + 2 * inv
    vmem_limit = int(min(64 << 20, max(32 << 20, 2 * need)))

    def build(single_buffer_invariants):
        # Grid-invariant operands (constant index maps) don't need double buffers.
        inv_kw = {"pipeline_mode": pl.Buffered(1)} if single_buffer_invariants else {}
        return pl.pallas_call(
            kernel,
            out_shape=jax.ShapeDtypeStruct((B * Ho, lane_out), x.dtype),
            grid=(B // bt,),
            in_specs=[
                pl.BlockSpec((bt * Hi, C * Wi), lambda i: (i, 0)),
                pl.BlockSpec((C * Wi, Kh * lane_out), lambda i: (0, 0), **inv_kw),
                pl.BlockSpec((Kh, bt * Ho, bt * Hi), lambda i: (0, 0, 0), **inv_kw),
                pl.BlockSpec((1, lane_out), lambda i: (0, 0), **inv_kw),
            ],
            out_specs=pl.BlockSpec((bt * Ho, lane_out), lambda i: (i, 0)),
            compiler_params=pltpu.CompilerParams(
                dimension_semantics=("parallel",),
                vmem_limit_bytes=vmem_limit),
        )

    try:
        out2 = build(True)(x2, Rt, BHj, brow)
    except Exception:
        # pipeline_mode=pl.Buffered(1) unsupported on this jax/libtpu combo:
        # fall back to default (double-buffered) pipelining.
        out2 = build(False)(x2, Rt, BHj, brow)

    # rows=(b,ho), lanes=(co,wo) -> (B, Ho, C, Wo); optional transpose back to NCHW.
    out = out2.reshape(B, Ho, C, Wo)
    if nchw_out:
        out = out.transpose(0, 2, 1, 3)
    return out


def _reference(x, weight, bias, stride):
    """Pure-JAX reference matching the PyTorch semantics (for validation)."""
    B, C, Hi, Wi = x.shape
    sh, sw = stride
    Ho, Wo = Hi * sh, Wi * sw
    Ah = jnp.asarray(_interp_matrix(Hi, Ho))
    Aw = jnp.asarray(_interp_matrix(Wi, Wo))
    up = jnp.einsum('oh,bchw->bcow', Ah, x, precision=jax.lax.Precision.HIGHEST)
    up = jnp.einsum('ow,bchw->bcho', Aw, up, precision=jax.lax.Precision.HIGHEST)
    h1, h2, v1, v2 = UPSAMPLE_STRIDE2PAD_DICT[stride]
    if h1 + h2 > 0:
        up = jnp.pad(up, ((0, 0), (0, 0), (0, 0), (h1, h2)), mode='wrap')
    if v1 + v2 > 0:
        up = jnp.pad(up, ((0, 0), (0, 0), (v1, v2), (0, 0)), mode='constant')
    out = jax.lax.conv_general_dilated(
        up, weight, window_strides=(1, 1), padding='VALID',
        dimension_numbers=('NCHW', 'OIHW', 'NCHW'),
        precision=jax.lax.Precision.HIGHEST)
    return out + bias[None, :, None, None]


if __name__ == "__main__":
    key = jax.random.PRNGKey(0)

    B, C, H, W = 2, 4, 16, 16
    for stride in [(2, 2), (1, 2)]:
        kx, kw_, kb, key = jax.random.split(key, 4)
        Kh, Kw = UPSAMPLE_STRIDE2KERNEL_DICT[stride]

        x = jax.random.normal(kx, (B, C, H, W), dtype=jnp.float32)
        weight = jax.random.normal(kw_, (C, C, Kh, Kw), dtype=jnp.float32) * 0.05
        bias = jax.random.normal(kb, (C,), dtype=jnp.float32) * 0.05

        out = jax.block_until_ready(
            upsample_forward(x, weight, bias, stride=stride, with_conv=True))
        ref = jax.block_until_ready(_reference(x, weight, bias, stride))

        assert out.shape == (B, C, H * stride[0], W * stride[1])
        np.testing.assert_allclose(np.asarray(out), np.asarray(ref), rtol=1e-3, atol=1e-3)

    print("KERNEL_OK")
</pallas_src>

<mosaic_0001>
module attributes {stable_mosaic.version = 11 : i64} {
  func.func @_upsample_conv_kernel(%arg0: i32, %arg1: memref<16x64xf32, #tpu.memory_space<vmem>>, %arg2: memref<64x384xf32, #tpu.memory_space<vmem>>, %arg3: memref<3x32x16xf32, #tpu.memory_space<vmem>>, %arg4: memref<1x128xf32, #tpu.memory_space<vmem>>, %arg5: memref<32x128xf32, #tpu.memory_space<vmem>>) attributes {dimension_semantics = [#tpu.dimension_semantics<parallel>], iteration_bounds = array<i64: 2>, scalar_prefetch = 0 : i64, scratch_operands = 0 : i64, tpu.core_type = #tpu.core_type<tc>, window_params = [{transform_indices = @transform_0, window_bounds = array<i64: 16, 64>}, {pipeline_mode = #tpu.pipeline_mode<synchronous>, transform_indices = @transform_1, window_bounds = array<i64: 64, 384>}, {pipeline_mode = #tpu.pipeline_mode<synchronous>, transform_indices = @transform_2, window_bounds = array<i64: 3, 32, 16>}, {pipeline_mode = #tpu.pipeline_mode<synchronous>, transform_indices = @transform_3, window_bounds = array<i64: 1, 128>}, {transform_indices = @transform_4, window_bounds = array<i64: 32, 128>}]} {
    %c0 = arith.constant 0 : index
    %c0_0 = arith.constant 0 : index
    %0 = vector.load %arg1[%c0, %c0_0] : memref<16x64xf32, #tpu.memory_space<vmem>>, vector<16x64xf32>
    %c0_1 = arith.constant 0 : index
    %c0_2 = arith.constant 0 : index
    %1 = vector.load %arg2[%c0_1, %c0_2] : memref<64x384xf32, #tpu.memory_space<vmem>>, vector<64x128xf32>
    %cst = arith.constant dense<0.000000e+00> : vector<16x128xf32>
    %2 = tpu.matmul %0, %1, %cst {dimension_numbers = #tpu.dot_dimension_numbers<[1], [0], [0], [1], [0, 0, 1, 1], [], []>} : vector<16x64xf32>, vector<64x128xf32>, vector<16x128xf32> -> vector<16x128xf32>
    %c0_3 = arith.constant 0 : index
    %c0_4 = arith.constant 0 : index
    %c0_5 = arith.constant 0 : index
    %3 = vector.load %arg3[%c0_3, %c0_4, %c0_5] : memref<3x32x16xf32, #tpu.memory_space<vmem>>, vector<1x32x16xf32>
    %4 = vector.shape_cast %3 : vector<1x32x16xf32> to vector<32x16xf32>
    %cst_6 = arith.constant dense<0.000000e+00> : vector<32x128xf32>
    %5 = tpu.matmul %4, %2, %cst_6 {dimension_numbers = #tpu.dot_dimension_numbers<[1], [0], [0], [1], [0, 0, 1, 1], [], []>} : vector<32x16xf32>, vector<16x128xf32>, vector<32x128xf32> -> vector<32x128xf32>
    %c0_7 = arith.constant 0 : index
    %c128 = arith.constant 128 : index
    %6 = vector.load %arg2[%c0_7, %c128] : memref<64x384xf32, #tpu.memory_space<vmem>>, vector<64x128xf32>
    %cst_8 = arith.constant dense<0.000000e+00> : vector<16x128xf32>
    %7 = tpu.matmul %0, %6, %cst_8 {dimension_numbers = #tpu.dot_dimension_numbers<[1], [0], [0], [1], [0, 0, 1, 1], [], []>} : vector<16x64xf32>, vector<64x128xf32>, vector<16x128xf32> -> vector<16x128xf32>
    %c1 = arith.constant 1 : index
    %c0_9 = arith.constant 0 : index
    %c0_10 = arith.constant 0 : index
    %8 = vector.load %arg3[%c1, %c0_9, %c0_10] : memref<3x32x16xf32, #tpu.memory_space<vmem>>, vector<1x32x16xf32>
    %9 = vector.shape_cast %8 : vector<1x32x16xf32> to vector<32x16xf32>
    %cst_11 = arith.constant dense<0.000000e+00> : vector<32x128xf32>
    %10 = tpu.matmul %9, %7, %cst_11 {dimension_numbers = #tpu.dot_dimension_numbers<[1], [0], [0], [1], [0, 0, 1, 1], [], []>} : vector<32x16xf32>, vector<16x128xf32>, vector<32x128xf32> -> vector<32x128xf32>
    %11 = arith.addf %5, %10 : vector<32x128xf32>
    %c0_12 = arith.constant 0 : index
    %c256 = arith.constant 256 : index
    %12 = vector.load %arg2[%c0_12, %c256] : memref<64x384xf32, #tpu.memory_space<vmem>>, vector<64x128xf32>
    %cst_13 = arith.constant dense<0.000000e+00> : vector<16x128xf32>
    %13 = tpu.matmul %0, %12, %cst_13 {dimension_numbers = #tpu.dot_dimension_numbers<[1], [0], [0], [1], [0, 0, 1, 1], [], []>} : vector<16x64xf32>, vector<64x128xf32>, vector<16x128xf32> -> vector<16x128xf32>
    %c2 = arith.constant 2 : index
    %c0_14 = arith.constant 0 : index
    %c0_15 = arith.constant 0 : index
    %14 = vector.load %arg3[%c2, %c0_14, %c0_15] : memref<3x32x16xf32, #tpu.memory_space<vmem>>, vector<1x32x16xf32>
    %15 = vector.shape_cast %14 : vector<1x32x16xf32> to vector<32x16xf32>
    %cst_16 = arith.constant dense<0.000000e+00> : vector<32x128xf32>
    %16 = tpu.matmul %15, %13, %cst_16 {dimension_numbers = #tpu.dot_dimension_numbers<[1], [0], [0], [1], [0, 0, 1, 1], [], []>} : vector<32x16xf32>, vector<16x128xf32>, vector<32x128xf32> -> vector<32x128xf32>
    %17 = arith.addf %11, %16 : vector<32x128xf32>
    %c0_17 = arith.constant 0 : index
    %c0_18 = arith.constant 0 : index
    %18 = vector.load %arg4[%c0_17, %c0_18] : memref<1x128xf32, #tpu.memory_space<vmem>>, vector<1x128xf32>
    %19 = vector.broadcast %18 : vector<1x128xf32> to vector<32x128xf32>
    %20 = arith.addf %17, %19 : vector<32x128xf32>
    %c0_19 = arith.constant 0 : index
    %c0_20 = arith.constant 0 : index
    %21 = vector.load %arg5[%c0_19, %c0_20] : memref<32x128xf32, #tpu.memory_space<vmem>>, vector<32x128xf32>
    tpu.vector_store %arg5[%c0_19, %c0_20], %20 {strides = array<i32>} : memref<32x128xf32, #tpu.memory_space<vmem>>, vector<32x128xf32>,
    return
  }
  func.func @transform_0(%arg0: i32) -> (i32, i32) {
    %c0_i32 = arith.constant 0 : i32
    %c0_i32_0 = arith.constant 0 : i32
    return %arg0, %c0_i32 : i32, i32
  }
  func.func @transform_1(%arg0: i32) -> (i32, i32) {
    %c0_i32 = arith.constant 0 : i32
    %c0_i32_0 = arith.constant 0 : i32
    %c0_i32_1 = arith.constant 0 : i32
    return %c0_i32, %c0_i32_0 : i32, i32
  }
  func.func @transform_2(%arg0: i32) -> (i32, i32, i32) {
    %c0_i32 = arith.constant 0 : i32
    %c0_i32_0 = arith.constant 0 : i32
    %c0_i32_1 = arith.constant 0 : i32
    %c0_i32_2 = arith.constant 0 : i32
    return %c0_i32, %c0_i32_0, %c0_i32_1 : i32, i32, i32
  }
  func.func @transform_3(%arg0: i32) -> (i32, i32) {
    %c0_i32 = arith.constant 0 : i32
    %c0_i32_0 = arith.constant 0 : i32
    %c0_i32_1 = arith.constant 0 : i32
    return %c0_i32, %c0_i32_0 : i32, i32
  }
  func.func @transform_4(%arg0: i32) -> (i32, i32) {
    %c0_i32 = arith.constant 0 : i32
    %c0_i32_0 = arith.constant 0 : i32
    return %arg0, %c0_i32 : i32, i32
  }
}

module attributes {stable_mosaic.version = 11 : i64} {
  func.func @_upsample_conv_kernel(%arg0: i32, %arg1: memref<16x64xf32, #tpu.memory_space<vmem>>, %arg2: memref<64x384xf32, #tpu.memory_space<vmem>>, %arg3: memref<3x32x16xf32, #tpu.memory_space<vmem>>, %arg4: memref<1x128xf32, #tpu.memory_space<vmem>>, %arg5: memref<32x128xf32, #tpu.memory_space<vmem>>) attributes {dimension_semantics = [#tpu.dimension_semantics<parallel>], iteration_bounds = array<i64: 2>, scalar_prefetch = 0 : i64, scratch_operands = 0 : i64, tpu.core_type = #tpu.core_type<tc>, window_params = [{transform_indices = @transform_0, window_bounds = array<i64: 16, 64>}, {pipeline_mode = #tpu.pipeline_mode<synchronous>, transform_indices = @transform_1, window_bounds = array<i64: 64, 384>}, {pipeline_mode = #tpu.pipeline_mode<synchronous>, transform_indices = @transform_2, window_bounds = array<i64: 3, 32, 16>}, {pipeline_mode = #tpu.pipeline_mode<synchronous>, transform_indices = @transform_3, window_bounds = array<i64: 1, 128>}, {transform_indices = @transform_4, window_bounds = array<i64: 32, 128>}]} {
    %c0 = arith.constant 0 : index
    %c0_0 = arith.constant 0 : index
    %0 = vector.load %arg1[%c0, %c0_0] : memref<16x64xf32, #tpu.memory_space<vmem>>, vector<16x64xf32>
    %c0_1 = arith.constant 0 : index
    %c0_2 = arith.constant 0 : index
    %1 = vector.load %arg2[%c0_1, %c0_2] : memref<64x384xf32, #tpu.memory_space<vmem>>, vector<64x128xf32>
    %cst = arith.constant dense<0.000000e+00> : vector<16x128xf32>
    %2 = tpu.matmul %0, %1, %cst {dimension_numbers = #tpu.dot_dimension_numbers<[1], [0], [0], [1], [0, 0, 1, 1], [], []>} : vector<16x64xf32>, vector<64x128xf32>, vector<16x128xf32> -> vector<16x128xf32>
    %c0_3 = arith.constant 0 : index
    %c0_4 = arith.constant 0 : index
    %c0_5 = arith.constant 0 : index
    %3 = vector.load %arg3[%c0_3, %c0_4, %c0_5] : memref<3x32x16xf32, #tpu.memory_space<vmem>>, vector<1x32x16xf32>
    %4 = vector.shape_cast %3 : vector<1x32x16xf32> to vector<32x16xf32>
    %cst_6 = arith.constant dense<0.000000e+00> : vector<32x128xf32>
    %5 = tpu.matmul %4, %2, %cst_6 {dimension_numbers = #tpu.dot_dimension_numbers<[1], [0], [0], [1], [0, 0, 1, 1], [], []>} : vector<32x16xf32>, vector<16x128xf32>, vector<32x128xf32> -> vector<32x128xf32>
    %c0_7 = arith.constant 0 : index
    %c128 = arith.constant 128 : index
    %6 = vector.load %arg2[%c0_7, %c128] : memref<64x384xf32, #tpu.memory_space<vmem>>, vector<64x128xf32>
    %cst_8 = arith.constant dense<0.000000e+00> : vector<16x128xf32>
    %7 = tpu.matmul %0, %6, %cst_8 {dimension_numbers = #tpu.dot_dimension_numbers<[1], [0], [0], [1], [0, 0, 1, 1], [], []>} : vector<16x64xf32>, vector<64x128xf32>, vector<16x128xf32> -> vector<16x128xf32>
    %c1 = arith.constant 1 : index
    %c0_9 = arith.constant 0 : index
    %c0_10 = arith.constant 0 : index
    %8 = vector.load %arg3[%c1, %c0_9, %c0_10] : memref<3x32x16xf32, #tpu.memory_space<vmem>>, vector<1x32x16xf32>
    %9 = vector.shape_cast %8 : vector<1x32x16xf32> to vector<32x16xf32>
    %cst_11 = arith.constant dense<0.000000e+00> : vector<32x128xf32>
    %10 = tpu.matmul %9, %7, %cst_11 {dimension_numbers = #tpu.dot_dimension_numbers<[1], [0], [0], [1], [0, 0, 1, 1], [], []>} : vector<32x16xf32>, vector<16x128xf32>, vector<32x128xf32> -> vector<32x128xf32>
    %11 = arith.addf %5, %10 : vector<32x128xf32>
    %c0_12 = arith.constant 0 : index
    %c256 = arith.constant 256 : index
    %12 = vector.load %arg2[%c0_12, %c256] : memref<64x384xf32, #tpu.memory_space<vmem>>, vector<64x128xf32>
    %cst_13 = arith.constant dense<0.000000e+00> : vector<16x128xf32>
    %13 = tpu.matmul %0, %12, %cst_13 {dimension_numbers = #tpu.dot_dimension_numbers<[1], [0], [0], [1], [0, 0, 1, 1], [], []>} : vector<16x64xf32>, vector<64x128xf32>, vector<16x128xf32> -> vector<16x128xf32>
    %c2 = arith.constant 2 : index
    %c0_14 = arith.constant 0 : index
    %c0_15 = arith.constant 0 : index
    %14 = vector.load %arg3[%c2, %c0_14, %c0_15] : memref<3x32x16xf32, #tpu.memory_space<vmem>>, vector<1x32x16xf32>
    %15 = vector.shape_cast %14 : vector<1x32x16xf32> to vector<32x16xf32>
    %cst_16 = arith.constant dense<0.000000e+00> : vector<32x128xf32>
    %16 = tpu.matmul %15, %13, %cst_16 {dimension_numbers = #tpu.dot_dimension_numbers<[1], [0], [0], [1], [0, 0, 1, 1], [], []>} : vector<32x16xf32>, vector<16x128xf32>, vector<32x128xf32> -> vector<32x128xf32>
    %17 = arith.addf %11, %16 : vector<32x128xf32>
    %c0_17 = arith.constant 0 : index
    %c0_18 = arith.constant 0 : index
    %18 = vector.load %arg4[%c0_17, %c0_18] : memref<1x128xf32, #tpu.memory_space<vmem>>, vector<1x128xf32>
    %19 = vector.broadcast %18 : vector<1x128xf32> to vector<32x128xf32>
    %20 = arith.addf %17, %19 : vector<32x128xf32>
    %c0_19 = arith.constant 0 : index
    %c0_20 = arith.constant 0 : index
    %21 = vector.load %arg5[%c0_19, %c0_20] : memref<32x128xf32, #tpu.memory_space<vmem>>, vector<32x128xf32>
    tpu.vector_store %arg5[%c0_19, %c0_20], %20 {strides = array<i32>} : memref<32x128xf32, #tpu.memory_space<vmem>>, vector<32x128xf32>,
    return
  }
  func.func @transform_0(%arg0: i32) -> (i32, i32) {
    %c0_i32 = arith.constant 0 : i32
    %c0_i32_0 = arith.constant 0 : i32
    return %arg0, %c0_i32 : i32, i32
  }
  func.func @transform_1(%arg0: i32) -> (i32, i32) {
    %c0_i32 = arith.constant 0 : i32
    %c0_i32_0 = arith.constant 0 : i32
    %c0_i32_1 = arith.constant 0 : i32
    return %c0_i32, %c0_i32_0 : i32, i32
  }
  func.func @transform_2(%arg0: i32) -> (i32, i32, i32) {
    %c0_i32 = arith.constant 0 : i32
    %c0_i32_0 = arith.constant 0 : i32
    %c0_i32_1 = arith.constant 0 : i32
    %c0_i32_2 = arith.constant 0 : i32
    return %c0_i32, %c0_i32_0, %c0_i32_1 : i32, i32, i32
  }
  func.func @transform_3(%arg0: i32) -> (i32, i32) {
    %c0_i32 = arith.constant 0 : i32
    %c0_i32_0 = arith.constant 0 : i32
    %c0_i32_1 = arith.constant 0 : i32
    return %c0_i32, %c0_i32_0 : i32, i32
  }
  func.func @transform_4(%arg0: i32) -> (i32, i32) {
    %c0_i32 = arith.constant 0 : i32
    %c0_i32_0 = arith.constant 0 : i32
    return %arg0, %c0_i32 : i32, i32
  }
}

</mosaic_0001>

<bundles_post_ra>
// kernel: tpu_custom_call.1
= control target key start
LH: loop header
LB: loop body
LE: loop exit
PB: predicated region body
PF: predicated region fallthrough
CT: control target
= control target key end

     0   :  { %9 = vsyncpa [#allocation3], 0  ;;  %s1510_s0 = inlined_call_operand.vmem [shape: f32[32,64], index: 0, kind: input, shape index: {}]   ;;  %s1511_s1 = inlined_call_operand.hbm [shape: f32[64,384], index: 1, kind: input, shape index: {}]   ;;  %s1512_s2 = inlined_call_operand.vmem [shape: f32[3,32,16], index: 2, kind: input, shape index: {}]   ;;  %s1513_s3 = inlined_call_operand.vmem [shape: f32[1,128], index: 3, kind: input, shape index: {}]   ;;  %s1514_s4 = inlined_call_operand.hbm [shape: f32[64,128], index: 4, kind: output, shape index: {}]  }
   0x1   :  { %10 = vsyncpa [#allocation4], 0 }
   0x2   :  { %12 = vsyncpa [#allocation4 + $0x1], 0  ;;  %s1311_s15 = smov 0   ;;  %s1313_s16 = smov 0  }
   0x3   :  { %s1315_s17 = smov 0   ;;  %s1317_s18 = smov 0  }
   0x4 LB: > { %s1332_s19 = sadd.s32 4294967295, %s1278_s18   ;;  %s885_s20 = sadd.s32 4294967294, %s1278_s18   ;;  %s1278_s18 = sphi %s1317_s18, %s1530_s18   ;;  %s1274_s17 = sphi %s1315_s17, %s1529_s17   ;;  %s1270_s16 = sphi %s1313_s16, %s1528_s16   ;;  %s1266_s15 = sphi %s1311_s15, %s1527_s15  }
   0x5   : > { %s1336_s21 = sadd.s32 1, %s1278_s18   ;;  %s114_s22 = sadd.s32 1, %s1274_s17 }
   0x6   : > { %s111_s23 = ssub.s32 %s1278_s18, %s1336_s21  ;;  %p124_p0 = scmp.ne.s32.totalorder %s1274_s17, %s1270_s16 }
   0x7   : > { %p112_p1 = scmp.eq.s32.totalorder %s111_s23, 0  ;;  %p125_p2 = scmp.eq.s32.totalorder %s1332_s19, 1 }
   0x8   : > { %p130_p3 = scmp.ne.s32.totalorder %s1270_s16, %s1266_s15  ;;  %p131_p4 = scmp.eq.s32.totalorder %s885_s20, 1 }
   0x9   : > { %s1347_s24 = scalar_select %p112_p1, %s1274_s17, %s114_s22  }
   0xa   : > { %p1349_p5 = por %p125_p2, %p124_p0  ;;  %p1353_p6 = por %p131_p4, %p130_p3 }
   0xb   : > { %p886_p7 = scmp.ge.s32.totalorder %s1278_s18, 1  ;;  %p138_p8 = scmp.lt.s32.totalorder %s1278_s18, 3 }
   0xc   : > { %s1518_s25 = scalar_select %p1349_p5, 1, 0 }
   0xd   : > { %s1519_s26 = scalar_select %p1353_p6, 1, 0 }
   0xe   : > { %p1515_p9 = scmp.eq.s32.totalorder %s1332_s19, 0  ;;  %p1360_p10 = pnand %p886_p7, %p138_p8 }
   0xf   : > { %s1280_s28 = smov [#allocation2]   ;;  %s1184_s7 = scalar_lea.hbm %s1511_s1, 3072 }
  0x10   : > { %s1520_s27 = scalar_select %p1360_p10, 1, 0 }
  0x11   : > { %s150_s29 = sshll.u32 %s1280_s28, 4  ;;  %p1136_p11 = pneg %p1360_p10  ;;  %s151_s29 = int_to_ptr.vmem [resolvable:$true] %s150_s29 }
  0x12   : > { %p1185_p13 = scmp.ne.s32.totalorder %s1511_s1, %s1184_s7  ;;  %p1191_p3 = scmp.lt.u32.totalorder %s1184_s7, %s1511_s1 }
  0x13   : > { %p1368_p12 = pnand %p1515_p9, %p1136_p11 }
  0x15   : > { %p1186_p0 = pneg %p1368_p12 }
  0x17   : > { %p1187_p1 = pnand %p1186_p0, %p1185_p13 }
  0x19   : > { %p1188_p2 = pneg %p1187_p1 }
  0x1b   : > { %p1193_p4 = pnand %p1191_p3, %p1188_p2 }
  0x1d   : > { %1196 = shalt.err (!%p1193_p4)
}
  0x1e   : > { %s1197_s12 = scalar_lea.vmem %s151_s29, 3072  ;;  %p1205_p9 = scmp.lt.s32.totalorder %s151_s29, %s151_s29 }
  0x1f   : > { %p1198_p7 = scmp.ne.s32.totalorder %s151_s29, %s1197_s12  ;;  %p1206_p6 = scmp.lt.s32.totalorder %s1197_s12, %s1197_s12 }
  0x21   : > { %p1200_p8 = pnand %p1198_p7, %p1186_p0  ;;  %p1207_p5 = por %p1206_p6, %p1205_p9 }
  0x23   : > { %p1201_p11 = pneg %p1200_p8 }
  0x25   : > { %p1208_p10 = pnand %p1207_p5, %p1201_p11 }
  0x27   : > { %1211 = shalt.err (!%p1208_p10)
}
  0x28   : > { %s1281_s13 = smov 384   ;;  %s1282_s14 = smov 24  }
  0x29   : > { %1139 = dma.hbm_to_vmem [thread:$0]  (!%p1368_p12), %s1511_s1, 3072, %s151_s29, [#allocation3], %s1281_s13, %s1281_s13, %s1282_s14  }
  0x2a   : > { %p1522_p13 = scmp.ne.s32.totalorder %s1520_s27, 0 }
  0x2b   : > { %p1523_p1 = scmp.eq.s32.totalorder (!%p1522_p13), %s1332_s19, 0 }
  0x2c   : > { %181 = sbr.rel (%p1522_p13) target bundleno = 761 (0x2f9), region = 36 }
  0x33   : > { %1257 = dma.done.wait (%p1523_p1), [#allocation3], 3072   ;;  %p1524_p0 = pmov %p1523_p1 }
  0x34   : > { %s892_s23 = sshll.u32 %s1332_s19, 1  ;;  %v310_v0 = vld [vmem:[#allocation2 + $0x8] sm:$0xff]  ;;  %v311_v1 = vld [vmem:[#allocation2 + $0x20] sm:$0xff]  ;;  %v312_v2 = vld [vmem:[#allocation2 + $0x38] sm:$0xff]  ;;  %vm224_vm0 = vcmask 523264   ;;  %vm398_vm1 = vcmask 130048  }
  0x35   : > { %1259 = vsyncadd (%p1524_p0), [#allocation3], 4294964224  ;;  %p208_p5 = scmp.lt.s32.totalorder %s892_s23, 3  ;;  %v1078_v3 = vpack.c.bf16 %v311_v1, %v310_v0  ;;  %v313_v4 = vld [vmem:[#allocation2 + $0x50] sm:$0xff]  ;;  %v314_v6 = vld [vmem:[#allocation2 + $0x68] sm:$0xff]  ;;  %s204_s12 = sand.u32 1, %s1270_s16  }
  0x36   : > { %v1082_v5 = vpack.c.bf16 %v313_v4, %v312_v2  ;;  %v315_v7 = vld [vmem:[#allocation2 + $0x80] sm:$0xff]  ;;  %v217_v10 = vld [vmem:[#allocation2 + $0x18] sm:$0xff]  ;;  %v317_v14 = vld [vmem:[#allocation2 + $0xb0] sm:$0xff]  ;;  %s891_s13 = sshll.u32 %s204_s12, 5  ;;  %p1525_p9 = scmp.ne.s32.totalorder %s1518_s25, 0 }
  0x37   : > { %s1532_s23 = smov (!%p208_p5, %s892_s23), 3  ;;  %1079 = vmatprep.subr.bf16.mxu1 %v1078_v3  ;;  %v216_v9 = vld [vmem:[#allocation2] sm:$0xff]  ;;  %v1086_v12 = vpack.c.bf16 %v315_v7, %v314_v6  ;;  %v316_v13 = vld [vmem:[#allocation2 + $0x98] sm:$0xff]  ;;  %v218_v17 = vld [vmem:[#allocation2 + $0x30] sm:$0xff]  ;;  %s206_s22 = scalar_lea.vmem [#allocation5], %s891_s13 }
  0x38   : > { %s893_s28 = sshll.u32 %s1532_s23, 3  ;;  %1081 = vmatpush3.bf16.msra.mxu1 %v1078_v3  ;;  %v1062_v11 = vpack.c.bf16 %v217_v10, %v216_v9  ;;  %v1090_v15 = vpack.c.bf16 %v317_v14, %v316_v13  ;;  %v219_v18 = vld [vmem:[#allocation2 + $0x48] sm:$0xff]  ;;  %v220_v20 = vld [vmem:[#allocation2 + $0x60] sm:$0xff]  ;;  %v221_v21 = vld [vmem:[#allocation2 + $0x78] sm:$0xff]  ;;  %s811_s23 = sshll.u32 %s206_s22, 4  ;;  %s1462_s23 = int_to_ptr.vmem [resolvable:$true] %s811_s23 }
  0x39   : > { %s211_s6 = scalar_lea.vmem %s1510_s0, %s893_s28  ;;  %1083 = vmatprep.subr.bf16.mxu1 %v1082_v5  ;;  %v1066_v19 = vpack.c.bf16 %v219_v18, %v218_v17  ;;  %v1070_v22 = vpack.c.bf16 %v221_v21, %v220_v20  ;;  %v898_v23 = vld [vmem:[%s1512_s2 + $0x20] sm:$0xff]  ;;  %v222_v24 = vld [vmem:[#allocation2 + $0x90] sm:$0xff]  ;;  %v223_v25 = vld [vmem:[#allocation2 + $0xa8] sm:$0xff]  ;;  %s926_s28 = sshll.u32 %s1332_s19, 9 }
  0x3a   : > { %v1398_v8 = vld [vmem:[%s211_s6] sm:$0xff]  ;;  %1063 = vmatprep.subr.bf16.mxu0 %v1062_v11  ;;  %v215_v16 = vld [vmem:[%s211_s6 + $0x8] sm:$0xff]  ;;  %v1074_v26 = vpack.c.bf16 %v223_v25, %v222_v24  ;;  %v593_v27 = vld [vmem:[#allocation2 + $0x10] sm:$0xff]  ;;  %s1467_s6 = scalar_lea.hbm %s1514_s4, %s926_s28  ;;  %s1469_s19 = scalar_lea.sflag [#allocation4], %s204_s12 }
  0x3b   : > { %1010 = vmatprep.mubr.msk.f32.mxu1 %vm224_vm0, %v1398_v8  ;;  %991 = vmatprep.mubr.msk.f32.mxu0 %vm224_vm0, %v1398_v8  ;;  %v594_v28 = vld [vmem:[#allocation2 + $0x28] sm:$0xff]  ;;  %v595_v33 = vld [vmem:[#allocation2 + $0x40] sm:$0xff]  ;;  %v596_v34 = vld [vmem:[#allocation2 + $0x58] sm:$0xff]  ;;  %s1212_s27 = scalar_lea.vmem %s1462_s23, 512  ;;  %s1283_s29 = smov [#allocation5]  }
  0x3c   : > { %1065 = vmatpush3.bf16.msra.mxu0 %v1062_v11  ;;  %1085 = vmatpush3.bf16.msra.mxu1 %v1082_v5  ;;  %v1102_v32 = vpack.c.bf16 %v594_v28, %v593_v27  ;;  %v899_v35 = vld [vmem:[%s1512_s2 + $0x28] sm:$0xff]  ;;  %v1106_v36 = vpack.c.bf16 %v596_v34, %v595_v33  ;;  %v900_v37 = vld [vmem:[%s1512_s2 + $0x30] sm:$0xff]  ;;  %v901_v40 = vld [vmem:[%s1512_s2 + $0x38] sm:$0xff]  ;;  %p1213_p6 = scmp.ne.s32.totalorder %s1462_s23, %s1212_s27  ;;  %s1216_s7 = sshll.u32 %s1283_s29, 4  ;;  %s1217_s7 = int_to_ptr.vmem [resolvable:$false] %s1216_s7 }
  0x3d   : > { %1087 = vmatprep.subr.bf16.mxu1 %v1086_v12  ;;  %1067 = vmatprep.subr.bf16.mxu0 %v1066_v19  ;;  %v597_v38 = vld [vmem:[#allocation2 + $0x70] sm:$0xff]  ;;  %v598_v39 = vld [vmem:[#allocation2 + $0x88] sm:$0xff]  ;;  %v599_v42 = vld [vmem:[#allocation2 + $0xa0] sm:$0xff]  ;;  %s1218_s8 = scalar_lea.vmem %s1217_s7, 1024  ;;  %p1219_p2 = scmp.lt.s32.totalorder %s1462_s23, %s1217_s7 }
  0x3e   : > { %v1110_v41 = vpack.c.bf16 %v598_v39, %v597_v38  ;;  %v600_v43 = vld [vmem:[#allocation2 + $0xb8] sm:$0xff]  ;;  %v306_v45 = vld [vmem:[%s1512_s2] sm:$0xff]  ;;  %v307_v49 = vld [vmem:[%s1512_s2 + $0x8] sm:$0xff]  ;;  %p1214_p10 = pnand %p1213_p6, %p1525_p9  ;;  %p1220_p3 = scmp.lt.s32.totalorder %s1218_s8, %s1212_s27 }
  0x3f   : > { %v1114_v44 = vpack.c.bf16 %v600_v43, %v599_v42  ;;  %v308_v50 = vld [vmem:[%s1512_s2 + $0x10] sm:$0xff]  ;;  %v309_v51 = vld [vmem:[%s1512_s2 + $0x18] sm:$0xff]  ;;  %v912_v52 = vld [vmem:[%s1512_s2 + $0x40] sm:$0xff] }
  0x40   : > { %1089 = vmatpush3.bf16.msra.mxu1 %v1086_v12  ;;  %1069 = vmatpush3.bf16.msra.mxu0 %v1066_v19  ;;  %v913_v60 = vld [vmem:[%s1512_s2 + $0x48] sm:$0xff]  ;;  %v914_v61 = vld [vmem:[%s1512_s2 + $0x50] sm:$0xff]  ;;  %v915_v62 = vld [vmem:[%s1512_s2 + $0x58] sm:$0xff]  ;;  %p1215_p12 = pneg %p1214_p10  ;;  %p1221_p4 = por %p1220_p3, %p1219_p2 }
  0x41   : > { %1091 = vmatprep.subr.bf16.mxu1 %v1090_v15  ;;  %1071 = vmatprep.subr.bf16.mxu0 %v1070_v22  ;;  %v920_v0 = vld [vmem:[%s1513_s3] ss:$0 sm:$0xff] }
  0x42   : > { %p1222_p7 = pnand %p1221_p4, %p1215_p12 }
  0x44   : > { %1093 = vmatpush3.bf16.msra.mxu1 %v1090_v15  ;;  %1073 = vmatpush3.bf16.msra.mxu0 %v1070_v22 }
  0x45   : > { %1075 = vmatprep.subr.bf16.mxu0 %v1074_v26 }
  0x47   : > { %1011 = vmatmul.mubr.msk.f32.vlgmr.msra.gmra.mrb[0].mxu1 %vm224_vm0, %v215_v16 }
  0x48   : > { %1017 = vmatprep.mubr.msk.f32.mxu1 %vm398_vm1, %v898_v23  ;;  %1077 = vmatpush3.bf16.msra.mxu0 %v1074_v26 }
  0x4b   : > { %992 = vmatmul.mubr.msk.f32.vlgmr.msra.gmra.mrb[0].mxu0 %vm224_vm0, %v215_v16 }
  0x4c   : > { %1027 = vmatprep.mubr.msk.f32.mxu0 %vm398_vm1, %v306_v45 }
 0x11a   : > { %v1012_v29 = vpop.f32.mrb[0].mxu1 }
 0x11b   : > { %v384_v30 = vpop.f32.mrb[1].mxu1 }
 0x11c   : > { %v1094_v31 = vpack.c.bf16 %v1012_v29, %v384_v30 }
 0x11e   : > { %1095 = vmatprep.subr.bf16.mxu1 %v1094_v31  ;;  %v993_v46 = vpop.f32.mrb[0].mxu0 }
 0x11f   : > { %1097 = vmatpush3.bf16.msra.mxu1 %v1094_v31  ;;  %v297_v47 = vpop.f32.mrb[1].mxu0 }
 0x120   : > { %1103 = vmatprep.subr.bf16.mxu1 %v1102_v32  ;;  %v1098_v48 = vpack.c.bf16 %v993_v46, %v297_v47 }
 0x122   : > { %1018 = vmatmul.mubr.msk.f32.vlgmr.msra.gmra.mrb[2].mxu1 %vm398_vm1, %v899_v35  ;;  %1099 = vmatprep.subr.bf16.mxu0 %v1098_v48 }
 0x123   : > { %1105 = vmatpush3.bf16.msra.mxu1 %v1102_v32  ;;  %1020 = vmatprep.mubr.msk.f32.mxu1 %vm398_vm1, %v900_v37 }
 0x124   : > { %1107 = vmatprep.subr.bf16.mxu1 %v1106_v36  ;;  %1101 = vmatpush3.bf16.msra.mxu0 %v1098_v48 }
 0x126   : > { %1021 = vmatmul.mubr.msk.f32.gmra.mrb[4].mxu1 %vm398_vm1, %v901_v40 }
 0x127   : > { %1109 = vmatpush3.bf16.msra.mxu1 %v1106_v36  ;;  %1049 = vmatprep.mubr.msk.f32.mxu1 %vm224_vm0, %v1398_v8 }
 0x128   : > { %1111 = vmatprep.subr.bf16.mxu1 %v1110_v41  ;;  %1028 = vmatmul.mubr.msk.f32.vlgmr.msra.gmra.mrb[2].mxu0 %vm398_vm1, %v307_v49 }
 0x129   : > { %1030 = vmatprep.mubr.msk.f32.mxu0 %vm398_vm1, %v308_v50 }
 0x12b   : > { %1113 = vmatpush3.bf16.msra.mxu1 %v1110_v41 }
 0x12c   : > { %1115 = vmatprep.subr.bf16.mxu1 %v1114_v44  ;;  %1031 = vmatmul.mubr.msk.f32.gmra.mrb[4].mxu0 %vm398_vm1, %v309_v51 }
 0x12d   : > { %1056 = vmatprep.mubr.msk.f32.mxu0 %vm398_vm1, %v912_v52 }
 0x12f   : > { %1117 = vmatpush3.bf16.msra.mxu1 %v1114_v44 }
 0x132   : > { %1050 = vmatmul.mubr.msk.f32.vlgmr.msra.gmra.mrb[6].mxu1 %vm224_vm0, %v215_v16 }
 0x1f5   : > { %v1019_v53 = vpop.f32.mrb[2].mxu1 }
 0x1f6   : > { %v477_v54 = vpop.f32.mrb[3].mxu1 }
 0x1f9   : > { %v1022_v55 = vpop.f32.mrb[4].mxu1 }
 0x1fa   : > { %v487_v56 = vpop.f32.mrb[5].mxu1 }
 0x205   : > { %v1051_v57 = vpop.f32.mrb[6].mxu1 }
 0x206   : > { %v667_v58 = vpop.f32.mrb[7].mxu1 }
 0x207   : > { %v1118_v59 = vpack.c.bf16 %v1051_v57, %v667_v58 }
 0x209   : > { %1119 = vmatprep.subr.bf16.mxu0 %v1118_v59 }
 0x20a   : > { %1121 = vmatpush3.bf16.msra.mxu0 %v1118_v59 }
 0x20d   : > { %1057 = vmatmul.mubr.msk.f32.vlgmr.msra.gmra.mrb[2].mxu0 %vm398_vm1, %v913_v60 }
 0x20e   : > { %1059 = vmatprep.mubr.msk.f32.mxu0 %vm398_vm1, %v914_v61 }
 0x211   : > { %1060 = vmatmul.mubr.msk.f32.gmra.mrb[4].mxu0 %vm398_vm1, %v915_v62 }
 0x2e0   : > { %v1058_v63 = vpop.f32.mrb[2].mxu0 }
 0x2e1   : > { %v1122_v1 = vadd.f32 %v1058_v63, %v1019_v53  ;;  %v759_v2 = vpop.f32.mrb[3].mxu0 }
 0x2e2   : > { %v1123_v3 = vadd.f32 %v759_v2, %v477_v54 }
 0x2e3   : > { %v790_v4 = vadd.f32 %v1122_v1, %v920_v0 }
 0x2e4   : > { %v789_v5 = vadd.f32 %v1123_v3, %v920_v0  ;;  %v1061_v6 = vpop.f32.mrb[4].mxu0 }
 0x2e5   : > { %794 = vst [vmem:[%s206_s22 + $0x8] sm:$0xff] %v790_v4  ;;  %v1124_v7 = vadd.f32 %v1061_v6, %v1022_v55  ;;  %v769_v8 = vpop.f32.mrb[5].mxu0 }
 0x2e6   : > { %793 = vst [vmem:[%s206_s22] sm:$0xff] %v789_v5  ;;  %v1125_v9 = vadd.f32 %v769_v8, %v487_v56 }
 0x2e7   : > { %v792_v10 = vadd.f32 %v1124_v7, %v920_v0 }
 0x2e8   : > { %v791_v11 = vadd.f32 %v1125_v9, %v920_v0 }
 0x2e9   : > { %796 = vst [vmem:[%s206_s22 + $0x18] sm:$0xff] %v792_v10 }
 0x2ea   : > { %795 = vst [vmem:[%s206_s22 + $0x10] sm:$0xff] %v791_v11 }
 0x2eb   : > { %1225 = shalt.err (!%p1222_p7)
}
 0x2ec   : > { %s1226_s9 = scalar_lea.hbm %s1467_s6, 512  ;;  %s1230_s12 = scalar_lea.hbm %s1514_s4, 1024 }
 0x2ed   : > { %p1227_p8 = scmp.ne.s32.totalorder %s1467_s6, %s1226_s9  ;;  %p1231_p1 = scmp.lt.u32.totalorder %s1467_s6, %s1514_s4 }
 0x2ee   : > { %p1232_p0 = scmp.lt.u32.totalorder %s1230_s12, %s1226_s9  ;;  %p1234_p6 = scmp.lt.u32.totalorder %s1226_s9, %s1467_s6 }
 0x2ef   : > { %p1228_p11 = pnand %p1227_p8, %p1525_p9 }
 0x2f0   : > { %p1233_p5 = por %p1232_p0, %p1231_p1 }
 0x2f1   : > { %p1229_p13 = pneg %p1228_p11 }
 0x2f2   : > { %p1235_p10 = por %p1234_p6, %p1233_p5 }
 0x2f4   : > { %p1236_p12 = pnand %p1235_p10, %p1229_p13 }
 0x2f6   : > { %1239 = shalt.err (!%p1236_p12)
}
 0x2f7   : > { %s1284_s20 = smov 128   ;;  %s1285_s22 = smov 8  }
 0x2f8   : > { %1134 = dma.vmem_to_hbm [thread:$0]  (%p1525_p9), %s1462_s23, 512, %s1467_s6, %s1469_s19, %s1284_s20, %s1284_s20, %s1285_s22  }
 0x2f9 PF: > { %p1146_p2 = scmp.ge.s32.totalorder %s1278_s18, 2  ;;  %s826_s28 = sand.u32 1, %s1266_s15  }
 0x2fa   : > { %p1526_p3 = scmp.ne.s32.totalorder %s1519_s26, 0  ;;  %s827_s5 = scalar_lea.sflag [#allocation4], %s826_s28 }
 0x2fc   : > { %p1141_p4 = pnand %p1146_p2, %p1526_p3 }
 0x2fe   : > { %1261 = dma.done.wait (!%p1141_p4), %s827_s5, 512  }
 0x2ff   : > { %1263 = vsyncadd (!%p1141_p4), %s827_s5, 4294966784  ;;  %p15_p7 = scmp.ge.s32.totalorder %s1336_s21, 4   ;;  %s1527_s15 = smov %s1270_s16 }
 0x300   : > { %s1528_s16 = smov %s1274_s17  ;;  %s1529_s17 = smov %s1347_s24 }
 0x301   : > { %s1530_s18 = smov %s1336_s21  ;;  %17 = sbr.rel (!%p15_p7) target bundleno = 4 (0x4), region = 78 }
 0x308   :  { %832 = vsyncpa [#allocation3], 1 }
 0x309   :  { %834 = vsyncpa [#allocation3 + $0x1], 1 }
 0x30a   :  { %835 = vsyncpa [#allocation4], 1 }
 0x30b   :  { %837 = vsyncpa [#allocation4 + $0x1], 1 }

// kernel: tpu_custom_call.1
= control target key start
LH: loop header
LB: loop body
LE: loop exit
PB: predicated region body
PF: predicated region fallthrough
CT: control target
= control target key end

     0   :  { %9 = vsyncpa [#allocation3], 0  ;;  %s1510_s0 = inlined_call_operand.vmem [shape: f32[32,64], index: 0, kind: input, shape index: {}]   ;;  %s1511_s1 = inlined_call_operand.hbm [shape: f32[64,384], index: 1, kind: input, shape index: {}]   ;;  %s1512_s2 = inlined_call_operand.vmem [shape: f32[3,32,16], index: 2, kind: input, shape index: {}]   ;;  %s1513_s3 = inlined_call_operand.vmem [shape: f32[1,128], index: 3, kind: input, shape index: {}]   ;;  %s1514_s4 = inlined_call_operand.hbm [shape: f32[64,128], index: 4, kind: output, shape index: {}]  }
   0x1   :  { %10 = vsyncpa [#allocation4], 0 }
   0x2   :  { %12 = vsyncpa [#allocation4 + $0x1], 0  ;;  %s1311_s15 = smov 0   ;;  %s1313_s16 = smov 0  }
   0x3   :  { %s1315_s17 = smov 0   ;;  %s1317_s18 = smov 0  }
   0x4 LB: > { %s1332_s19 = sadd.s32 4294967295, %s1278_s18   ;;  %s885_s20 = sadd.s32 4294967294, %s1278_s18   ;;  %s1278_s18 = sphi %s1317_s18, %s1530_s18   ;;  %s1274_s17 = sphi %s1315_s17, %s1529_s17   ;;  %s1270_s16 = sphi %s1313_s16, %s1528_s16   ;;  %s1266_s15 = sphi %s1311_s15, %s1527_s15  }
   0x5   : > { %s1336_s21 = sadd.s32 1, %s1278_s18   ;;  %s114_s22 = sadd.s32 1, %s1274_s17 }
   0x6   : > { %s111_s23 = ssub.s32 %s1278_s18, %s1336_s21  ;;  %p124_p0 = scmp.ne.s32.totalorder %s1274_s17, %s1270_s16 }
   0x7   : > { %p112_p1 = scmp.eq.s32.totalorder %s111_s23, 0  ;;  %p125_p2 = scmp.eq.s32.totalorder %s1332_s19, 1 }
   0x8   : > { %p130_p3 = scmp.ne.s32.totalorder %s1270_s16, %s1266_s15  ;;  %p131_p4 = scmp.eq.s32.totalorder %s885_s20, 1 }
   0x9   : > { %s1347_s24 = scalar_select %p112_p1, %s1274_s17, %s114_s22  }
   0xa   : > { %p1349_p5 = por %p125_p2, %p124_p0  ;;  %p1353_p6 = por %p131_p4, %p130_p3 }
   0xb   : > { %p886_p7 = scmp.ge.s32.totalorder %s1278_s18, 1  ;;  %p138_p8 = scmp.lt.s32.totalorder %s1278_s18, 3 }
   0xc   : > { %s1518_s25 = scalar_select %p1349_p5, 1, 0 }
   0xd   : > { %s1519_s26 = scalar_select %p1353_p6, 1, 0 }
   0xe   : > { %p1515_p9 = scmp.eq.s32.totalorder %s1332_s19, 0  ;;  %p1360_p10 = pnand %p886_p7, %p138_p8 }
   0xf   : > { %s1280_s28 = smov [#allocation2]   ;;  %s1184_s7 = scalar_lea.hbm %s1511_s1, 3072 }
  0x10   : > { %s1520_s27 = scalar_select %p1360_p10, 1, 0 }
  0x11   : > { %s150_s29 = sshll.u32 %s1280_s28, 4  ;;  %p1136_p11 = pneg %p1360_p10  ;;  %s151_s29 = int_to_ptr.vmem [resolvable:$true] %s150_s29 }
  0x12   : > { %p1185_p13 = scmp.ne.s32.totalorder %s1511_s1, %s1184_s7  ;;  %p1191_p3 = scmp.lt.u32.totalorder %s1184_s7, %s1511_s1 }
  0x13   : > { %p1368_p12 = pnand %p1515_p9, %p1136_p11 }
  0x15   : > { %p1186_p0 = pneg %p1368_p12 }
  0x17   : > { %p1187_p1 = pnand %p1186_p0, %p1185_p13 }
  0x19   : > { %p1188_p2 = pneg %p1187_p1 }
  0x1b   : > { %p1193_p4 = pnand %p1191_p3, %p1188_p2 }
  0x1d   : > { %1196 = shalt.err (!%p1193_p4)
}
  0x1e   : > { %s1197_s12 = scalar_lea.vmem %s151_s29, 3072  ;;  %p1205_p9 = scmp.lt.s32.totalorder %s151_s29, %s151_s29 }
  0x1f   : > { %p1198_p7 = scmp.ne.s32.totalorder %s151_s29, %s1197_s12  ;;  %p1206_p6 = scmp.lt.s32.totalorder %s1197_s12, %s1197_s12 }
  0x21   : > { %p1200_p8 = pnand %p1198_p7, %p1186_p0  ;;  %p1207_p5 = por %p1206_p6, %p1205_p9 }
  0x23   : > { %p1201_p11 = pneg %p1200_p8 }
  0x25   : > { %p1208_p10 = pnand %p1207_p5, %p1201_p11 }
  0x27   : > { %1211 = shalt.err (!%p1208_p10)
}
  0x28   : > { %s1281_s13 = smov 384   ;;  %s1282_s14 = smov 24  }
  0x29   : > { %1139 = dma.hbm_to_vmem [thread:$0]  (!%p1368_p12), %s1511_s1, 3072, %s151_s29, [#allocation3], %s1281_s13, %s1281_s13, %s1282_s14  }
  0x2a   : > { %p1522_p13 = scmp.ne.s32.totalorder %s1520_s27, 0 }
  0x2b   : > { %p1523_p1 = scmp.eq.s32.totalorder (!%p1522_p13), %s1332_s19, 0 }
  0x2c   : > { %181 = sbr.rel (%p1522_p13) target bundleno = 761 (0x2f9), region = 36 }
  0x33   : > { %1257 = dma.done.wait (%p1523_p1), [#allocation3], 3072   ;;  %p1524_p0 = pmov %p1523_p1 }
  0x34   : > { %s892_s23 = sshll.u32 %s1332_s19, 1  ;;  %v310_v0 = vld [vmem:[#allocation2 + $0x8] sm:$0xff]  ;;  %v311_v1 = vld [vmem:[#allocation2 + $0x20] sm:$0xff]  ;;  %v312_v2 = vld [vmem:[#allocation2 + $0x38] sm:$0xff]  ;;  %vm224_vm0 = vcmask 523264   ;;  %vm398_vm1 = vcmask 130048  }
  0x35   : > { %1259 = vsyncadd (%p1524_p0), [#allocation3], 4294964224  ;;  %p208_p5 = scmp.lt.s32.totalorder %s892_s23, 3  ;;  %v1078_v3 = vpack.c.bf16 %v311_v1, %v310_v0  ;;  %v313_v4 = vld [vmem:[#allocation2 + $0x50] sm:$0xff]  ;;  %v314_v6 = vld [vmem:[#allocation2 + $0x68] sm:$0xff]  ;;  %s204_s12 = sand.u32 1, %s1270_s16  }
  0x36   : > { %v1082_v5 = vpack.c.bf16 %v313_v4, %v312_v2  ;;  %v315_v7 = vld [vmem:[#allocation2 + $0x80] sm:$0xff]  ;;  %v217_v10 = vld [vmem:[#allocation2 + $0x18] sm:$0xff]  ;;  %v317_v14 = vld [vmem:[#allocation2 + $0xb0] sm:$0xff]  ;;  %s891_s13 = sshll.u32 %s204_s12, 5  ;;  %p1525_p9 = scmp.ne.s32.totalorder %s1518_s25, 0 }
  0x37   : > { %s1532_s23 = smov (!%p208_p5, %s892_s23), 3  ;;  %1079 = vmatprep.subr.bf16.mxu1 %v1078_v3  ;;  %v216_v9 = vld [vmem:[#allocation2] sm:$0xff]  ;;  %v1086_v12 = vpack.c.bf16 %v315_v7, %v314_v6  ;;  %v316_v13 = vld [vmem:[#allocation2 + $0x98] sm:$0xff]  ;;  %v218_v17 = vld [vmem:[#allocation2 + $0x30] sm:$0xff]  ;;  %s206_s22 = scalar_lea.vmem [#allocation5], %s891_s13 }
  0x38   : > { %s893_s28 = sshll.u32 %s1532_s23, 3  ;;  %1081 = vmatpush3.bf16.msra.mxu1 %v1078_v3  ;;  %v1062_v11 = vpack.c.bf16 %v217_v10, %v216_v9  ;;  %v1090_v15 = vpack.c.bf16 %v317_v14, %v316_v13  ;;  %v219_v18 = vld [vmem:[#allocation2 + $0x48] sm:$0xff]  ;;  %v220_v20 = vld [vmem:[#allocation2 + $0x60] sm:$0xff]  ;;  %v221_v21 = vld [vmem:[#allocation2 + $0x78] sm:$0xff]  ;;  %s811_s23 = sshll.u32 %s206_s22, 4  ;;  %s1462_s23 = int_to_ptr.vmem [resolvable:$true] %s811_s23 }
  0x39   : > { %s211_s6 = scalar_lea.vmem %s1510_s0, %s893_s28  ;;  %1083 = vmatprep.subr.bf16.mxu1 %v1082_v5  ;;  %v1066_v19 = vpack.c.bf16 %v219_v18, %v218_v17  ;;  %v1070_v22 = vpack.c.bf16 %v221_v21, %v220_v20  ;;  %v898_v23 = vld [vmem:[%s1512_s2 + $0x20] sm:$0xff]  ;;  %v222_v24 = vld [vmem:[#allocation2 + $0x90] sm:$0xff]  ;;  %v223_v25 = vld [vmem:[#allocation2 + $0xa8] sm:$0xff]  ;;  %s926_s28 = sshll.u32 %s1332_s19, 9 }
  0x3a   : > { %v1398_v8 = vld [vmem:[%s211_s6] sm:$0xff]  ;;  %1063 = vmatprep.subr.bf16.mxu0 %v1062_v11  ;;  %v215_v16 = vld [vmem:[%s211_s6 + $0x8] sm:$0xff]  ;;  %v1074_v26 = vpack.c.bf16 %v223_v25, %v222_v24  ;;  %v593_v27 = vld [vmem:[#allocation2 + $0x10] sm:$0xff]  ;;  %s1467_s6 = scalar_lea.hbm %s1514_s4, %s926_s28  ;;  %s1469_s19 = scalar_lea.sflag [#allocation4], %s204_s12 }
  0x3b   : > { %1010 = vmatprep.mubr.msk.f32.mxu1 %vm224_vm0, %v1398_v8  ;;  %991 = vmatprep.mubr.msk.f32.mxu0 %vm224_vm0, %v1398_v8  ;;  %v594_v28 = vld [vmem:[#allocation2 + $0x28] sm:$0xff]  ;;  %v595_v33 = vld [vmem:[#allocation2 + $0x40] sm:$0xff]  ;;  %v596_v34 = vld [vmem:[#allocation2 + $0x58] sm:$0xff]  ;;  %s1212_s27 = scalar_lea.vmem %s1462_s23, 512  ;;  %s1283_s29 = smov [#allocation5]  }
  0x3c   : > { %1065 = vmatpush3.bf16.msra.mxu0 %v1062_v11  ;;  %1085 = vmatpush3.bf16.msra.mxu1 %v1082_v5  ;;  %v1102_v32 = vpack.c.bf16 %v594_v28, %v593_v27  ;;  %v899_v35 = vld [vmem:[%s1512_s2 + $0x28] sm:$0xff]  ;;  %v1106_v36 = vpack.c.bf16 %v596_v34, %v595_v33  ;;  %v900_v37 = vld [vmem:[%s1512_s2 + $0x30] sm:$0xff]  ;;  %v901_v40 = vld [vmem:[%s1512_s2 + $0x38] sm:$0xff]  ;;  %p1213_p6 = scmp.ne.s32.totalorder %s1462_s23, %s1212_s27  ;;  %s1216_s7 = sshll.u32 %s1283_s29, 4  ;;  %s1217_s7 = int_to_ptr.vmem [resolvable:$false] %s1216_s7 }
  0x3d   : > { %1087 = vmatprep.subr.bf16.mxu1 %v1086_v12  ;;  %1067 = vmatprep.subr.bf16.mxu0 %v1066_v19  ;;  %v597_v38 = vld [vmem:[#allocation2 + $0x70] sm:$0xff]  ;;  %v598_v39 = vld [vmem:[#allocation2 + $0x88] sm:$0xff]  ;;  %v599_v42 = vld [vmem:[#allocation2 + $0xa0] sm:$0xff]  ;;  %s1218_s8 = scalar_lea.vmem %s1217_s7, 1024  ;;  %p1219_p2 = scmp.lt.s32.totalorder %s1462_s23, %s1217_s7 }
  0x3e   : > { %v1110_v41 = vpack.c.bf16 %v598_v39, %v597_v38  ;;  %v600_v43 = vld [vmem:[#allocation2 + $0xb8] sm:$0xff]  ;;  %v306_v45 = vld [vmem:[%s1512_s2] sm:$0xff]  ;;  %v307_v49 = vld [vmem:[%s1512_s2 + $0x8] sm:$0xff]  ;;  %p1214_p10 = pnand %p1213_p6, %p1525_p9  ;;  %p1220_p3 = scmp.lt.s32.totalorder %s1218_s8, %s1212_s27 }
  0x3f   : > { %v1114_v44 = vpack.c.bf16 %v600_v43, %v599_v42  ;;  %v308_v50 = vld [vmem:[%s1512_s2 + $0x10] sm:$0xff]  ;;  %v309_v51 = vld [vmem:[%s1512_s2 + $0x18] sm:$0xff]  ;;  %v912_v52 = vld [vmem:[%s1512_s2 + $0x40] sm:$0xff] }
  0x40   : > { %1089 = vmatpush3.bf16.msra.mxu1 %v1086_v12  ;;  %1069 = vmatpush3.bf16.msra.mxu0 %v1066_v19  ;;  %v913_v60 = vld [vmem:[%s1512_s2 + $0x48] sm:$0xff]  ;;  %v914_v61 = vld [vmem:[%s1512_s2 + $0x50] sm:$0xff]  ;;  %v915_v62 = vld [vmem:[%s1512_s2 + $0x58] sm:$0xff]  ;;  %p1215_p12 = pneg %p1214_p10  ;;  %p1221_p4 = por %p1220_p3, %p1219_p2 }
  0x41   : > { %1091 = vmatprep.subr.bf16.mxu1 %v1090_v15  ;;  %1071 = vmatprep.subr.bf16.mxu0 %v1070_v22  ;;  %v920_v0 = vld [vmem:[%s1513_s3] ss:$0 sm:$0xff] }
  0x42   : > { %p1222_p7 = pnand %p1221_p4, %p1215_p12 }
  0x44   : > { %1093 = vmatpush3.bf16.msra.mxu1 %v1090_v15  ;;  %1073 = vmatpush3.bf16.msra.mxu0 %v1070_v22 }
  0x45   : > { %1075 = vmatprep.subr.bf16.mxu0 %v1074_v26 }
  0x47   : > { %1011 = vmatmul.mubr.msk.f32.vlgmr.msra.gmra.mrb[0].mxu1 %vm224_vm0, %v215_v16 }
  0x48   : > { %1017 = vmatprep.mubr.msk.f32.mxu1 %vm398_vm1, %v898_v23  ;;  %1077 = vmatpush3.bf16.msra.mxu0 %v1074_v26 }
  0x4b   : > { %992 = vmatmul.mubr.msk.f32.vlgmr.msra.gmra.mrb[0].mxu0 %vm224_vm0, %v215_v16 }
  0x4c   : > { %1027 = vmatprep.mubr.msk.f32.mxu0 %vm398_vm1, %v306_v45 }
 0x11a   : > { %v1012_v29 = vpop.f32.mrb[0].mxu1 }
 0x11b   : > { %v384_v30 = vpop.f32.mrb[1].mxu1 }
 0x11c   : > { %v1094_v31 = vpack.c.bf16 %v1012_v29, %v384_v30 }
 0x11e   : > { %1095 = vmatprep.subr.bf16.mxu1 %v1094_v31  ;;  %v993_v46 = vpop.f32.mrb[0].mxu0 }
 0x11f   : > { %1097 = vmatpush3.bf16.msra.mxu1 %v1094_v31  ;;  %v297_v47 = vpop.f32.mrb[1].mxu0 }
 0x120   : > { %1103 = vmatprep.subr.bf16.mxu1 %v1102_v32  ;;  %v1098_v48 = vpack.c.bf16 %v993_v46, %v297_v47 }
 0x122   : > { %1018 = vmatmul.mubr.msk.f32.vlgmr.msra.gmra.mrb[2].mxu1 %vm398_vm1, %v899_v35  ;;  %1099 = vmatprep.subr.bf16.mxu0 %v1098_v48 }
 0x123   : > { %1105 = vmatpush3.bf16.msra.mxu1 %v1102_v32  ;;  %1020 = vmatprep.mubr.msk.f32.mxu1 %vm398_vm1, %v900_v37 }
 0x124   : > { %1107 = vmatprep.subr.bf16.mxu1 %v1106_v36  ;;  %1101 = vmatpush3.bf16.msra.mxu0 %v1098_v48 }
 0x126   : > { %1021 = vmatmul.mubr.msk.f32.gmra.mrb[4].mxu1 %vm398_vm1, %v901_v40 }
 0x127   : > { %1109 = vmatpush3.bf16.msra.mxu1 %v1106_v36  ;;  %1049 = vmatprep.mubr.msk.f32.mxu1 %vm224_vm0, %v1398_v8 }
 0x128   : > { %1111 = vmatprep.subr.bf16.mxu1 %v1110_v41  ;;  %1028 = vmatmul.mubr.msk.f32.vlgmr.msra.gmra.mrb[2].mxu0 %vm398_vm1, %v307_v49 }
 0x129   : > { %1030 = vmatprep.mubr.msk.f32.mxu0 %vm398_vm1, %v308_v50 }
 0x12b   : > { %1113 = vmatpush3.bf16.msra.mxu1 %v1110_v41 }
 0x12c   : > { %1115 = vmatprep.subr.bf16.mxu1 %v1114_v44  ;;  %1031 = vmatmul.mubr.msk.f32.gmra.mrb[4].mxu0 %vm398_vm1, %v309_v51 }
 0x12d   : > { %1056 = vmatprep.mubr.msk.f32.mxu0 %vm398_vm1, %v912_v52 }
 0x12f   : > { %1117 = vmatpush3.bf16.msra.mxu1 %v1114_v44 }
 0x132   : > { %1050 = vmatmul.mubr.msk.f32.vlgmr.msra.gmra.mrb[6].mxu1 %vm224_vm0, %v215_v16 }
 0x1f5   : > { %v1019_v53 = vpop.f32.mrb[2].mxu1 }
 0x1f6   : > { %v477_v54 = vpop.f32.mrb[3].mxu1 }
 0x1f9   : > { %v1022_v55 = vpop.f32.mrb[4].mxu1 }
 0x1fa   : > { %v487_v56 = vpop.f32.mrb[5].mxu1 }
 0x205   : > { %v1051_v57 = vpop.f32.mrb[6].mxu1 }
 0x206   : > { %v667_v58 = vpop.f32.mrb[7].mxu1 }
 0x207   : > { %v1118_v59 = vpack.c.bf16 %v1051_v57, %v667_v58 }
 0x209   : > { %1119 = vmatprep.subr.bf16.mxu0 %v1118_v59 }
 0x20a   : > { %1121 = vmatpush3.bf16.msra.mxu0 %v1118_v59 }
 0x20d   : > { %1057 = vmatmul.mubr.msk.f32.vlgmr.msra.gmra.mrb[2].mxu0 %vm398_vm1, %v913_v60 }
 0x20e   : > { %1059 = vmatprep.mubr.msk.f32.mxu0 %vm398_vm1, %v914_v61 }
 0x211   : > { %1060 = vmatmul.mubr.msk.f32.gmra.mrb[4].mxu0 %vm398_vm1, %v915_v62 }
 0x2e0   : > { %v1058_v63 = vpop.f32.mrb[2].mxu0 }
 0x2e1   : > { %v1122_v1 = vadd.f32 %v1058_v63, %v1019_v53  ;;  %v759_v2 = vpop.f32.mrb[3].mxu0 }
 0x2e2   : > { %v1123_v3 = vadd.f32 %v759_v2, %v477_v54 }
 0x2e3   : > { %v790_v4 = vadd.f32 %v1122_v1, %v920_v0 }
 0x2e4   : > { %v789_v5 = vadd.f32 %v1123_v3, %v920_v0  ;;  %v1061_v6 = vpop.f32.mrb[4].mxu0 }
 0x2e5   : > { %794 = vst [vmem:[%s206_s22 + $0x8] sm:$0xff] %v790_v4  ;;  %v1124_v7 = vadd.f32 %v1061_v6, %v1022_v55  ;;  %v769_v8 = vpop.f32.mrb[5].mxu0 }
 0x2e6   : > { %793 = vst [vmem:[%s206_s22] sm:$0xff] %v789_v5  ;;  %v1125_v9 = vadd.f32 %v769_v8, %v487_v56 }
 0x2e7   : > { %v792_v10 = vadd.f32 %v1124_v7, %v920_v0 }
 0x2e8   : > { %v791_v11 = vadd.f32 %v1125_v9, %v920_v0 }
 0x2e9   : > { %796 = vst [vmem:[%s206_s22 + $0x18] sm:$0xff] %v792_v10 }
 0x2ea   : > { %795 = vst [vmem:[%s206_s22 + $0x10] sm:$0xff] %v791_v11 }
 0x2eb   : > { %1225 = shalt.err (!%p1222_p7)
}
 0x2ec   : > { %s1226_s9 = scalar_lea.hbm %s1467_s6, 512  ;;  %s1230_s12 = scalar_lea.hbm %s1514_s4, 1024 }
 0x2ed   : > { %p1227_p8 = scmp.ne.s32.totalorder %s1467_s6, %s1226_s9  ;;  %p1231_p1 = scmp.lt.u32.totalorder %s1467_s6, %s1514_s4 }
 0x2ee   : > { %p1232_p0 = scmp.lt.u32.totalorder %s1230_s12, %s1226_s9  ;;  %p1234_p6 = scmp.lt.u32.totalorder %s1226_s9, %s1467_s6 }
 0x2ef   : > { %p1228_p11 = pnand %p1227_p8, %p1525_p9 }
 0x2f0   : > { %p1233_p5 = por %p1232_p0, %p1231_p1 }
 0x2f1   : > { %p1229_p13 = pneg %p1228_p11 }
 0x2f2   : > { %p1235_p10 = por %p1234_p6, %p1233_p5 }
 0x2f4   : > { %p1236_p12 = pnand %p1235_p10, %p1229_p13 }
 0x2f6   : > { %1239 = shalt.err (!%p1236_p12)
}
 0x2f7   : > { %s1284_s20 = smov 128   ;;  %s1285_s22 = smov 8  }
 0x2f8   : > { %1134 = dma.vmem_to_hbm [thread:$0]  (%p1525_p9), %s1462_s23, 512, %s1467_s6, %s1469_s19, %s1284_s20, %s1284_s20, %s1285_s22  }
 0x2f9 PF: > { %p1146_p2 = scmp.ge.s32.totalorder %s1278_s18, 2  ;;  %s826_s28 = sand.u32 1, %s1266_s15  }
 0x2fa   : > { %p1526_p3 = scmp.ne.s32.totalorder %s1519_s26, 0  ;;  %s827_s5 = scalar_lea.sflag [#allocation4], %s826_s28 }
 0x2fc   : > { %p1141_p4 = pnand %p1146_p2, %p1526_p3 }
 0x2fe   : > { %1261 = dma.done.wait (!%p1141_p4), %s827_s5, 512  }
 0x2ff   : > { %1263 = vsyncadd (!%p1141_p4), %s827_s5, 4294966784  ;;  %p15_p7 = scmp.ge.s32.totalorder %s1336_s21, 4   ;;  %s1527_s15 = smov %s1270_s16 }
 0x300   : > { %s1528_s16 = smov %s1274_s17  ;;  %s1529_s17 = smov %s1347_s24 }
 0x301   : > { %s1530_s18 = smov %s1336_s21  ;;  %17 = sbr.rel (!%p15_p7) target bundleno = 4 (0x4), region = 78 }
 0x308   :  { %832 = vsyncpa [#allocation3], 1 }
 0x309   :  { %834 = vsyncpa [#allocation3 + $0x1], 1 }
 0x30a   :  { %835 = vsyncpa [#allocation4], 1 }
 0x30b   :  { %837 = vsyncpa [#allocation4 + $0x1], 1 }

</bundles_post_ra>
